<compile_context>
chip_gen: v7x
topology: tpu7x:2x2x1
jax: 0.10.0
libtpu: 0.0.40
codegen_flags: <defaults>
</compile_context>

<pallas_src>
import itertools

import numpy as np
import jax
import jax.numpy as jnp
from jax import lax
from jax.experimental import pallas as pl
from jax.experimental.pallas import tpu as pltpu


def _round_up(x, m):
    return (x + m - 1) // m * m


def _pad_rows(x, rows):
    pad = rows - x.shape[0]
    if pad == 0:
        return x
    return jnp.pad(x, ((0, pad),) + ((0, 0),) * (x.ndim - 1))


# Packed target slab row layout (shape (_PACK_ROWS, T_pad), f32):
#   rows 0..3  : target sub boxes  cx, cy, w, h
#   rows 4..8  : target sub boxes  x0, y0, x1, y1, area
#   rows 9..12 : target obj boxes  cx, cy, w, h
#   rows 13..17: target obj boxes  x0, y0, x1, y1, area
#   row  18    : any(target obj box != 0)        (0/1 float)
#   row  19    : all(target obj box == 0)        (0/1 float)
#   row  20    : (H - colsum(t)) / (H - colsum(t) + 1e-4)   (= neg_count/neg_den)
#   row  21    : 1 / (H - colsum(t) + 1e-4)                 (= 1/neg_den)
#   rows 22..23: zero padding (sublane alignment)
_PACK_ROWS = 24


# ------------------------------- Pallas kernel --------------------------------

def _make_cost_kernel(w_hoi, w_obj, w_bbox, w_giou):
    """Builds the kernel computing one (TM, T_pad) tile of the HOI cost matrix."""
    dn = (((1,), (1,)), ((), ()))   # contract last dims of both operands
    EPS = 1e-9                      # guards 0/0 in GIoU for degenerate boxes

    def _l1(cols, tpk, base):
        # torch.cdist(p=1) of pred (TM,4) vs resident target rows (4, T_pad)
        c = jnp.abs(cols[0] - tpk[base:base + 1, :])
        for k in range(1, 4):
            c = c + jnp.abs(cols[k] - tpk[base + k:base + k + 1, :])
        return c

    def _giou(x0a, y0a, x1a, y1a, area_a, tpk, base):
        # target xyxy + area are precomputed on the host (rows base..base+4)
        x0b = tpk[base + 0:base + 1, :]
        y0b = tpk[base + 1:base + 2, :]
        x1b = tpk[base + 2:base + 3, :]
        y1b = tpk[base + 3:base + 4, :]
        area_b = tpk[base + 4:base + 5, :]
        iw = jnp.maximum(jnp.minimum(x1a, x1b) - jnp.maximum(x0a, x0b), 0.0)
        ih = jnp.maximum(jnp.minimum(y1a, y1b) - jnp.maximum(y0a, y0b), 0.0)
        inter = iw * ih
        union = area_a + area_b - inter
        iou = inter * pl.reciprocal(union + EPS, approx=True)
        ew = jnp.maximum(jnp.maximum(x1a, x1b) - jnp.minimum(x0a, x0b), 0.0)
        eh = jnp.maximum(jnp.maximum(y1a, y1b) - jnp.minimum(y0a, y0b), 0.0)
        enc = ew * eh
        return iou - (enc - union) * pl.reciprocal(enc + EPS, approx=True)

    def kernel(hoi_ref, obj_ref, sb_ref, ob_ref,
               thoi_s_ref, tobj1h_ref, tpack_ref, c_ref):
        tpk = tpack_ref[...]                                    # (24, T_pad) f32

        # ---- HOI (multi-label) classification cost ------------------------
        # cost = -( pos/pos_den + neg/neg_den )/2 with
        #   neg = H - rowsum(p) - colsum(t) + pos  (second matmul eliminated)
        # and both denominators folded into thoi_scaled on the host.
        p = jax.nn.sigmoid(hoi_ref[...])                        # (TM, H) f32
        rs_p = jnp.sum(p, axis=-1, keepdims=True)               # (TM, 1)
        pos_s = lax.dot_general(p.astype(jnp.bfloat16), thoi_s_ref[...], dn,
                                preferred_element_type=jnp.float32)   # (TM, T_pad)
        c_t = tpk[20:21, :]
        ind = tpk[21:22, :]
        cost_hoi = (-0.5 * w_hoi) * (pos_s + c_t - rs_p * ind)

        # ---- object classification cost (softmax + one-hot gather matmul) --
        logits = obj_ref[...]                                   # (TM, C)
        e = jnp.exp(logits - jnp.max(logits, axis=-1, keepdims=True))
        se = jnp.sum(e, axis=-1, keepdims=True)                 # (TM, 1)
        gathered = lax.dot_general(e.astype(jnp.bfloat16), tobj1h_ref[...], dn,
                                   preferred_element_type=jnp.float32)  # (TM, T_pad)
        cost_obj = -gathered * pl.reciprocal(se, approx=True)

        # ---- box L1 cost ----------------------------------------------------
        sb = sb_ref[...]                                        # (TM, 4)
        ob = ob_ref[...]
        s_cols = [sb[:, k:k + 1] for k in range(4)]             # sliced once, shared
        o_cols = [ob[:, k:k + 1] for k in range(4)]
        any_nz = tpk[18:19, :]
        all_z = tpk[19:20, :]

        cost_bbox = jnp.maximum(_l1(s_cols, tpk, 0),
                                _l1(o_cols, tpk, 9) * any_nz)

        # ---- GIoU cost ------------------------------------------------------
        def pred_xyxy(cols):
            cx, cy, w, h = cols
            hw = 0.5 * w
            hh = 0.5 * h
            return cx - hw, cy - hh, cx + hw, cy + hh, w * h

        sx0, sy0, sx1, sy1, s_area = pred_xyxy(s_cols)
        ox0, oy0, ox1, oy1, o_area = pred_xyxy(o_cols)
        cost_sub_giou = -_giou(sx0, sy0, sx1, sy1, s_area, tpk, 4)
        cost_obj_giou = (-_giou(ox0, oy0, ox1, oy1, o_area, tpk, 13)
                         + cost_sub_giou * all_z)
        cost_giou = jnp.maximum(cost_sub_giou, cost_obj_giou)

        # ---- final cost (HOI weight applied twice, exactly like torch) ------
        c_ref[...] = (cost_hoi + w_bbox * cost_bbox
                      + w_giou * cost_giou + w_obj * cost_obj)

    return kernel


# ------------------------------- host wrapper ---------------------------------

class HungarianMatcherHOI:
    def __init__(self, cost_obj_class=1.0, cost_verb_class=1.0, cost_bbox=1.0,
                 cost_giou=1.0, cost_hoi_class=1.0):
        self.cost_obj_class = float(cost_obj_class)
        self.cost_verb_class = float(cost_verb_class)
        self.cost_hoi_class = float(cost_hoi_class)
        self.cost_bbox = float(cost_bbox)
        self.cost_giou = float(cost_giou)
        assert cost_obj_class != 0 or cost_verb_class != 0 or cost_bbox != 0 or cost_giou != 0, \
            "all costs cant be 0"

    def cost_matrix(self, outputs, targets, row_tile=None):
        bs, nq = outputs['pred_sub_boxes'].shape[:2]
        N = bs * nq

        if 'pred_hoi_logits' in outputs:
            class_logits = outputs['pred_hoi_logits']
            tgt_cls = jnp.concatenate([t['hoi_labels'] for t in targets], axis=0)
            w_inner = self.cost_hoi_class
        else:
            class_logits = outputs['pred_verb_logits']
            tgt_cls = jnp.concatenate([t['verb_labels'] for t in targets], axis=0)
            w_inner = self.cost_verb_class

        tgt_obj_labels = jnp.concatenate([t['obj_labels'] for t in targets], axis=0)
        tgt_sub = jnp.concatenate([t['sub_boxes'] for t in targets], axis=0).astype(jnp.float32)
        tgt_obj = jnp.concatenate([t['obj_boxes'] for t in targets], axis=0).astype(jnp.float32)
        T = int(tgt_sub.shape[0])
        if T == 0:  # degenerate case handled outside the kernel
            return jnp.zeros((bs, nq, 0), jnp.float32)

        hoi = class_logits.reshape(N, -1).astype(jnp.float32)
        obj = outputs['pred_obj_logits'].reshape(N, -1).astype(jnp.float32)
        sb = outputs['pred_sub_boxes'].reshape(N, 4).astype(jnp.float32)
        ob = outputs['pred_obj_boxes'].reshape(N, 4).astype(jnp.float32)
        n_hoi = int(hoi.shape[1])
        n_obj = int(obj.shape[1])

        # ---- row tiling: bounded tiles + automatic double-buffering ---------
        if row_tile is None:
            n8 = _round_up(N, 8)
            TM = n8 if n8 <= 512 else 256
        else:
            TM = int(row_tile)
        N_pad = _round_up(N, TM)
        T_pad = _round_up(T, 128)      # lane-dense targets / output

        hoi = _pad_rows(hoi, N_pad)
        obj = _pad_rows(obj, N_pad)
        sb = _pad_rows(sb, N_pad)
        ob = _pad_rows(ob, N_pad)

        # ---- host-side target preprocessing (hoisted out of the tile loop) --
        thoi = tgt_cls.astype(jnp.float32)                 # (T, H)
        colsum = jnp.sum(thoi, axis=1)                     # (T,)
        ipd = 1.0 / (colsum + 1e-4)                        # 1 / pos_den
        ind = 1.0 / (n_hoi - colsum + 1e-4)                # 1 / neg_den
        thoi_scaled = thoi * (ipd + ind)[:, None]          # folds both denominators
        c_t = (n_hoi - colsum) * ind

        def box_rows(b):
            cx, cy, w, h = b[:, 0], b[:, 1], b[:, 2], b[:, 3]
            x0 = cx - 0.5 * w
            y0 = cy - 0.5 * h
            x1 = cx + 0.5 * w
            y1 = cy + 0.5 * h
            return jnp.stack([cx, cy, w, h, x0, y0, x1, y1, (x1 - x0) * (y1 - y0)], axis=0)

        any_nz = jnp.any(tgt_obj != 0, axis=1).astype(jnp.float32)
        tpack = jnp.concatenate(
            [box_rows(tgt_sub), box_rows(tgt_obj),
             jnp.stack([any_nz, 1.0 - any_nz, c_t, ind], axis=0)], axis=0)   # (22, T)
        tpack = jnp.pad(tpack, ((0, _PACK_ROWS - tpack.shape[0]), (0, T_pad - T)))

        tobj1h = jax.nn.one_hot(tgt_obj_labels, n_obj, dtype=jnp.float32)
        thoi_scaled = jnp.pad(thoi_scaled, ((0, T_pad - T), (0, 0))).astype(jnp.bfloat16)
        tobj1h = jnp.pad(tobj1h, ((0, T_pad - T), (0, 0))).astype(jnp.bfloat16)

        kernel = _make_cost_kernel(self.cost_hoi_class * w_inner, self.cost_obj_class,
                                   self.cost_bbox, self.cost_giou)

        out = pl.pallas_call(
            kernel,
            out_shape=jax.ShapeDtypeStruct((N_pad, T_pad), jnp.float32),
            grid=(N_pad // TM,),
            in_specs=[
                pl.BlockSpec((TM, n_hoi), lambda i: (i, 0)),          # pred hoi logits
                pl.BlockSpec((TM, n_obj), lambda i: (i, 0)),          # pred obj logits
                pl.BlockSpec((TM, 4), lambda i: (i, 0)),              # pred sub boxes
                pl.BlockSpec((TM, 4), lambda i: (i, 0)),              # pred obj boxes
                pl.BlockSpec((T_pad, n_hoi), lambda i: (0, 0)),       # resident targets
                pl.BlockSpec((T_pad, n_obj), lambda i: (0, 0)),
                pl.BlockSpec((_PACK_ROWS, T_pad), lambda i: (0, 0)),
            ],
            out_specs=pl.BlockSpec((TM, T_pad), lambda i: (i, 0)),
            compiler_params=pltpu.CompilerParams(
                dimension_semantics=("parallel",),      # shard row tiles across TCs (v7x)
                vmem_limit_bytes=32 * 1024 * 1024),
        )(hoi, obj, sb, ob, thoi_scaled, tobj1h, tpack)

        return out[:N, :T].reshape(bs, nq, T)

    def __call__(self, outputs, targets):
        C = self.cost_matrix(outputs, targets)
        C = jax.block_until_ready(C)
        Cn = np.asarray(C)
        sizes = [int(t['sub_boxes'].shape[0]) for t in targets]
        # TODO(synk): scipy.optimize.linear_sum_assignment has no Pallas equivalent;
        # solved on host with an O(n^3) Hungarian (Jonker-Volgenant style) in numpy.
        indices, start = [], 0
        for i, s in enumerate(sizes):
            indices.append(_linear_sum_assignment(Cn[i, :, start:start + s]))
            start += s
        return [(np.asarray(a, np.int64), np.asarray(b, np.int64)) for a, b in indices], C


# ------------------------ host-side optimal assignment ------------------------

def _hungarian(a):
    """a: (n, m) float64 with n <= m. Returns n (row, col) pairs minimizing cost."""
    n, m = a.shape
    INF = float("inf")
    u = [0.0] * (n + 1)
    v = [0.0] * (m + 1)
    p = [0] * (m + 1)      # p[j] = row (1-indexed) assigned to column j
    way = [0] * (m + 1)
    for i in range(1, n + 1):
        p[0] = i
        j0 = 0
        minv = [INF] * (m + 1)
        used = [False] * (m + 1)
        while True:
            used[j0] = True
            i0 = p[j0]
            delta = INF
            j1 = 0
            for j in range(1, m + 1):
                if not used[j]:
                    cur = a[i0 - 1, j - 1] - u[i0] - v[j]
                    if cur < minv[j]:
                        minv[j] = cur
                        way[j] = j0
                    if minv[j] < delta:
                        delta = minv[j]
                        j1 = j
            for j in range(m + 1):
                if used[j]:
                    u[p[j]] += delta
                    v[j] -= delta
                else:
                    minv[j] -= delta
            j0 = j1
            if p[j0] == 0:
                break
        while j0 != 0:
            j1 = way[j0]
            p[j0] = p[j1]
            j0 = j1
    return [(p[j] - 1, j - 1) for j in range(1, m + 1) if p[j] != 0]


def _linear_sum_assignment(cost):
    """Optimal rectangular assignment; assigns min(n_rows, n_cols) pairs."""
    cost = np.asarray(cost, np.float64)
    n_rows, n_cols = cost.shape
    if n_rows == 0 or n_cols == 0:
        return np.zeros(0, np.int64), np.zeros(0, np.int64)
    if n_rows >= n_cols:
        pairs = [(r, c) for (c, r) in _hungarian(cost.T)]
    else:
        pairs = _hungarian(cost)
    pairs.sort()
    return (np.array([p[0] for p in pairs], np.int64),
            np.array([p[1] for p in pairs], np.int64))


def _brute_force_value(cost):
    cost = np.asarray(cost, np.float64)
    n_rows, n_cols = cost.shape
    best = None
    for rows in itertools.permutations(range(n_rows), n_cols):
        val = cost[list(rows), list(range(n_cols))].sum()
        if best is None or val < best:
            best = val
    return best


# ------------------------------ numpy reference -------------------------------

def _reference_cost(outputs, targets, w_hoi, w_obj, w_bbox, w_giou):
    hoi = np.asarray(outputs['pred_hoi_logits'], np.float32)
    obj = np.asarray(outputs['pred_obj_logits'], np.float32)
    bs, nq = hoi.shape[:2]
    hoi = hoi.reshape(bs * nq, -1)
    obj = obj.reshape(bs * nq, -1)
    sb = np.asarray(outputs['pred_sub_boxes'], np.float32).reshape(bs * nq, 4)
    ob = np.asarray(outputs['pred_obj_boxes'], np.float32).reshape(bs * nq, 4)
    thoi = np.concatenate([np.asarray(t['hoi_labels'], np.float32) for t in targets])
    tlab = np.concatenate([np.asarray(t['obj_labels']) for t in targets])
    tsb = np.concatenate([np.asarray(t['sub_boxes'], np.float32) for t in targets])
    tob = np.concatenate([np.asarray(t['obj_boxes'], np.float32) for t in targets])

    p = 1.0 / (1.0 + np.exp(-hoi))
    tp = thoi.T
    c_hoi = -(p @ tp / (tp.sum(0, keepdims=True) + 1e-4)
              + (1 - p) @ (1 - tp) / ((1 - tp).sum(0, keepdims=True) + 1e-4)) / 2
    c_hoi = w_hoi * c_hoi

    e = np.exp(obj - obj.max(-1, keepdims=True))
    sm = e / e.sum(-1, keepdims=True)
    c_obj = -sm[:, tlab]

    def cdist1(a, b):
        return np.abs(a[:, None, :] - b[None, :, :]).sum(-1)

    def xyxy(b):
        cx, cy, w, h = b[:, 0], b[:, 1], b[:, 2], b[:, 3]
        return np.stack([cx - w / 2, cy - h / 2, cx + w / 2, cy + h / 2], -1)

    def giou(a, b):
        a, b = xyxy(a), xyxy(b)
        area_a = (a[:, 2] - a[:, 0]) * (a[:, 3] - a[:, 1])
        area_b = (b[:, 2] - b[:, 0]) * (b[:, 3] - b[:, 1])
        lt = np.maximum(a[:, None, :2], b[None, :, :2])
        rb = np.minimum(a[:, None, 2:], b[None, :, 2:])
        wh = np.clip(rb - lt, 0, None)
        inter = wh[..., 0] * wh[..., 1]
        union = area_a[:, None] + area_b[None, :] - inter
        iou = inter / union
        lt2 = np.minimum(a[:, None, :2], b[None, :, :2])
        rb2 = np.maximum(a[:, None, 2:], b[None, :, 2:])
        wh2 = np.clip(rb2 - lt2, 0, None)
        enc = wh2[..., 0] * wh2[..., 1]
        return iou - (enc - union) / enc

    csb = cdist1(sb, tsb)
    cob = cdist1(ob, tob) * (tob != 0).any(1)[None, :]
    c_bbox = np.maximum(csb, cob)
    csg = -giou(sb, tsb)
    cog = -giou(ob, tob) + csg * (tob == 0).all(1)[None, :]
    c_giou = np.maximum(csg, cog)

    C = w_hoi * c_hoi + w_bbox * c_bbox + w_giou * c_giou + w_obj * c_obj
    return C.reshape(bs, nq, -1)


# ----------------------------------- main --------------------------------------

if __name__ == "__main__":
    key = jax.random.PRNGKey(0)
    bs, nq, num_hoi, num_obj = 2, 8, 16, 8
    sizes = [3, 3]
    keys = jax.random.split(key, 8)

    outputs = {
        'pred_hoi_logits': jax.random.normal(keys[0], (bs, nq, num_hoi), jnp.float32),
        'pred_obj_logits': jax.random.normal(keys[1], (bs, nq, num_obj), jnp.float32),
        'pred_sub_boxes': jax.nn.sigmoid(jax.random.normal(keys[2], (bs, nq, 4), jnp.float32)),
        'pred_obj_boxes': jax.nn.sigmoid(jax.random.normal(keys[3], (bs, nq, 4), jnp.float32)),
    }

    targets = []
    for b in range(bs):
        s = sizes[b]
        kk = jax.random.split(keys[4 + b], 4)
        hoi_labels = (jax.random.uniform(kk[0], (s, num_hoi)) < 0.25).astype(jnp.float32)
        obj_labels = jax.random.randint(kk[1], (s,), 0, num_obj)
        sub_boxes = jax.nn.sigmoid(jax.random.normal(kk[2], (s, 4), jnp.float32))
        obj_boxes = jax.nn.sigmoid(jax.random.normal(kk[3], (s, 4), jnp.float32))
        if b == 1:
            obj_boxes = obj_boxes.at[0].set(0.0)  # exercise the "missing object box" masking path
        targets.append({'hoi_labels': hoi_labels, 'obj_labels': obj_labels,
                        'sub_boxes': sub_boxes, 'obj_boxes': obj_boxes})

    matcher = HungarianMatcherHOI()
    indices, C = matcher(outputs, targets)
    C = jax.block_until_ready(C)

    # Tolerance accounts for intentional bf16 MXU operands + approx reciprocals
    # (costs are O(1); matching is unaffected).
    ref = _reference_cost(outputs, targets, matcher.cost_hoi_class, matcher.cost_obj_class,
                          matcher.cost_bbox, matcher.cost_giou)
    assert np.allclose(np.asarray(C), ref, rtol=3e-2, atol=3e-2), "cost matrix mismatch vs reference"

    # Exercise the multi-step grid path (TM=8 -> grid=(2,), resident targets reused).
    C_tiled = jax.block_until_ready(matcher.cost_matrix(outputs, targets, row_tile=8))
    assert np.allclose(np.asarray(C_tiled), np.asarray(C), rtol=0.0, atol=1e-5), \
        "tiled grid path disagrees with single-tile path"

    # Assignment sanity: optimal value matches brute force, shapes correct.
    Cn = np.asarray(C)
    start = 0
    for i, s in enumerate(sizes):
        sub = Cn[i, :, start:start + s]
        r, c = indices[i]
        assert r.shape[0] == s and c.shape[0] == s and len(set(r.tolist())) == s
        assert np.isclose(sub[r, c].sum(), _brute_force_value(sub), atol=1e-6), \
            "Hungarian assignment is not optimal"
        start += s

    print("KERNEL_OK")
</pallas_src>

<mosaic_0001>
module attributes {stable_mosaic.version = 11 : i64} {
  func.func @kernel(%arg0: i32, %arg1: memref<16x16xf32, #tpu.memory_space<vmem>>, %arg2: memref<16x8xf32, #tpu.memory_space<vmem>>, %arg3: memref<16x4xf32, #tpu.memory_space<vmem>>, %arg4: memref<16x4xf32, #tpu.memory_space<vmem>>, %arg5: memref<128x16xbf16, #tpu.memory_space<vmem>>, %arg6: memref<128x8xbf16, #tpu.memory_space<vmem>>, %arg7: memref<24x128xf32, #tpu.memory_space<vmem>>, %arg8: memref<16x128xf32, #tpu.memory_space<vmem>>) attributes {dimension_semantics = [#tpu.dimension_semantics<parallel>], iteration_bounds = array<i64: 1>, scalar_prefetch = 0 : i64, scratch_operands = 0 : i64, tpu.core_type = #tpu.core_type<tc>, window_params = [{transform_indices = @transform_0, window_bounds = array<i64: 16, 16>}, {transform_indices = @transform_1, window_bounds = array<i64: 16, 8>}, {transform_indices = @transform_2, window_bounds = array<i64: 16, 4>}, {transform_indices = @transform_3, window_bounds = array<i64: 16, 4>}, {pipeline_mode = #tpu.pipeline_mode<synchronous>, transform_indices = @transform_4, window_bounds = array<i64: 128, 16>}, {pipeline_mode = #tpu.pipeline_mode<synchronous>, transform_indices = @transform_5, window_bounds = array<i64: 128, 8>}, {pipeline_mode = #tpu.pipeline_mode<synchronous>, transform_indices = @transform_6, window_bounds = array<i64: 24, 128>}, {transform_indices = @transform_7, window_bounds = array<i64: 16, 128>}]} {
    %c0 = arith.constant 0 : index
    %c0_0 = arith.constant 0 : index
    %0 = vector.load %arg7[%c0, %c0_0] : memref<24x128xf32, #tpu.memory_space<vmem>>, vector<24x128xf32>
    %c0_1 = arith.constant 0 : index
    %c0_2 = arith.constant 0 : index
    %1 = vector.load %arg1[%c0_1, %c0_2] : memref<16x16xf32, #tpu.memory_space<vmem>>, vector<16x16xf32>
    %2 = arith.negf %1 : vector<16x16xf32>
    %3 = math.exp %2 : vector<16x16xf32>
    %cst = arith.constant 1.000000e+00 : f32
    %4 = vector.broadcast %cst : f32 to vector<16x16xf32>
    %5 = arith.addf %4, %3 : vector<16x16xf32>
    %6 = arith.divf %4, %5 : vector<16x16xf32>
    %cst_3 = arith.constant dense<0.000000e+00> : vector<16xf32>
    %7 = vector.multi_reduction <add>, %6, %cst_3 [1] : vector<16x16xf32> to vector<16xf32>
    %8 = vector.shape_cast %7 : vector<16xf32> to vector<16x1xf32>
    %9 = arith.truncf %6 : vector<16x16xf32> to vector<16x16xbf16>
    %c0_4 = arith.constant 0 : index
    %c0_5 = arith.constant 0 : index
    %10 = vector.load %arg5[%c0_4, %c0_5] : memref<128x16xbf16, #tpu.memory_space<vmem>>, vector<128x16xbf16>
    %cst_6 = arith.constant dense<0.000000e+00> : vector<16x128xf32>
    %11 = tpu.matmul %9, %10, %cst_6 {dimension_numbers = #tpu.dot_dimension_numbers<[1], [1], [0], [0], [0, 0, 1, 0], [], []>} : vector<16x16xbf16>, vector<128x16xbf16>, vector<16x128xf32> -> vector<16x128xf32>
    %12 = vector.extract_strided_slice %0 {offsets = [20, 0], sizes = [1, 128], strides = [1, 1]} : vector<24x128xf32> to vector<1x128xf32>
    %13 = vector.extract_strided_slice %0 {offsets = [21, 0], sizes = [1, 128], strides = [1, 1]} : vector<24x128xf32> to vector<1x128xf32>
    %14 = vector.broadcast %12 : vector<1x128xf32> to vector<16x128xf32>
    %15 = arith.addf %11, %14 : vector<16x128xf32>
    %16 = vector.broadcast %8 : vector<16x1xf32> to vector<16x128xf32>
    %17 = vector.broadcast %13 : vector<1x128xf32> to vector<16x128xf32>
    %18 = arith.mulf %16, %17 : vector<16x128xf32>
    %19 = arith.subf %15, %18 : vector<16x128xf32>
    %cst_7 = arith.constant -5.000000e-01 : f32
    %20 = vector.broadcast %cst_7 : f32 to vector<16x128xf32>
    %21 = arith.mulf %20, %19 : vector<16x128xf32>
    %c0_8 = arith.constant 0 : index
    %c0_9 = arith.constant 0 : index
    %22 = vector.load %arg2[%c0_8, %c0_9] : memref<16x8xf32, #tpu.memory_space<vmem>>, vector<16x8xf32>
    %cst_10 = arith.constant dense<0xFF800000> : vector<16xf32>
    %23 = vector.multi_reduction <maximumf>, %22, %cst_10 [1] : vector<16x8xf32> to vector<16xf32>
    %24 = vector.shape_cast %23 : vector<16xf32> to vector<16x1xf32>
    %25 = vector.broadcast %24 : vector<16x1xf32> to vector<16x8xf32>
    %26 = arith.subf %22, %25 : vector<16x8xf32>
    %27 = math.exp %26 : vector<16x8xf32>
    %cst_11 = arith.constant dense<0.000000e+00> : vector<16xf32>
    %28 = vector.multi_reduction <add>, %27, %cst_11 [1] : vector<16x8xf32> to vector<16xf32>
    %29 = vector.shape_cast %28 : vector<16xf32> to vector<16x1xf32>
    %30 = arith.truncf %27 : vector<16x8xf32> to vector<16x8xbf16>
    %c0_12 = arith.constant 0 : index
    %c0_13 = arith.constant 0 : index
    %31 = vector.load %arg6[%c0_12, %c0_13] : memref<128x8xbf16, #tpu.memory_space<vmem>>, vector<128x8xbf16>
    %cst_14 = arith.constant dense<0.000000e+00> : vector<16x128xf32>
    %32 = tpu.matmul %30, %31, %cst_14 {dimension_numbers = #tpu.dot_dimension_numbers<[1], [1], [0], [0], [0, 0, 1, 0], [], []>} : vector<16x8xbf16>, vector<128x8xbf16>, vector<16x128xf32> -> vector<16x128xf32>
    %cst_15 = arith.constant 0.000000e+00 : f32
    %33 = vector.broadcast %cst_15 : f32 to vector<16x128xf32>
    %34 = arith.subf %33, %32 : vector<16x128xf32>
    %35 = tpu.reciprocal %29 {approx = true} : vector<16x1xf32> -> vector<16x1xf32>
    %36 = vector.broadcast %35 : vector<16x1xf32> to vector<16x128xf32>
    %37 = arith.mulf %34, %36 : vector<16x128xf32>
    %c0_16 = arith.constant 0 : index
    %c0_17 = arith.constant 0 : index
    %38 = vector.load %arg3[%c0_16, %c0_17] : memref<16x4xf32, #tpu.memory_space<vmem>>, vector<16x4xf32>
    %c0_18 = arith.constant 0 : index
    %c0_19 = arith.constant 0 : index
    %39 = vector.load %arg4[%c0_18, %c0_19] : memref<16x4xf32, #tpu.memory_space<vmem>>, vector<16x4xf32>
    %40 = vector.extract_strided_slice %38 {offsets = [0, 0], sizes = [16, 1], strides = [1, 1]} : vector<16x4xf32> to vector<16x1xf32>
    %41 = vector.extract_strided_slice %38 {offsets = [0, 1], sizes = [16, 1], strides = [1, 1]} : vector<16x4xf32> to vector<16x1xf32>
    %42 = vector.extract_strided_slice %38 {offsets = [0, 2], sizes = [16, 1], strides = [1, 1]} : vector<16x4xf32> to vector<16x1xf32>
    %43 = vector.extract_strided_slice %38 {offsets = [0, 3], sizes = [16, 1], strides = [1, 1]} : vector<16x4xf32> to vector<16x1xf32>
    %44 = vector.extract_strided_slice %39 {offsets = [0, 0], sizes = [16, 1], strides = [1, 1]} : vector<16x4xf32> to vector<16x1xf32>
    %45 = vector.extract_strided_slice %39 {offsets = [0, 1], sizes = [16, 1], strides = [1, 1]} : vector<16x4xf32> to vector<16x1xf32>
    %46 = vector.extract_strided_slice %39 {offsets = [0, 2], sizes = [16, 1], strides = [1, 1]} : vector<16x4xf32> to vector<16x1xf32>
    %47 = vector.extract_strided_slice %39 {offsets = [0, 3], sizes = [16, 1], strides = [1, 1]} : vector<16x4xf32> to vector<16x1xf32>
    %48 = vector.extract_strided_slice %0 {offsets = [18, 0], sizes = [1, 128], strides = [1, 1]} : vector<24x128xf32> to vector<1x128xf32>
    %49 = vector.extract_strided_slice %0 {offsets = [19, 0], sizes = [1, 128], strides = [1, 1]} : vector<24x128xf32> to vector<1x128xf32>
    %50 = vector.extract_strided_slice %0 {offsets = [0, 0], sizes = [1, 128], strides = [1, 1]} : vector<24x128xf32> to vector<1x128xf32>
    %51 = vector.broadcast %40 : vector<16x1xf32> to vector<16x128xf32>
    %52 = vector.broadcast %50 : vector<1x128xf32> to vector<16x128xf32>
    %53 = arith.subf %51, %52 : vector<16x128xf32>
    %54 = math.absf %53 : vector<16x128xf32>
    %55 = vector.extract_strided_slice %0 {offsets = [1, 0], sizes = [1, 128], strides = [1, 1]} : vector<24x128xf32> to vector<1x128xf32>
    %56 = vector.broadcast %41 : vector<16x1xf32> to vector<16x128xf32>
    %57 = vector.broadcast %55 : vector<1x128xf32> to vector<16x128xf32>
    %58 = arith.subf %56, %57 : vector<16x128xf32>
    %59 = math.absf %58 : vector<16x128xf32>
    %60 = arith.addf %54, %59 : vector<16x128xf32>
    %61 = vector.extract_strided_slice %0 {offsets = [2, 0], sizes = [1, 128], strides = [1, 1]} : vector<24x128xf32> to vector<1x128xf32>
    %62 = vector.broadcast %42 : vector<16x1xf32> to vector<16x128xf32>
    %63 = vector.broadcast %61 : vector<1x128xf32> to vector<16x128xf32>
    %64 = arith.subf %62, %63 : vector<16x128xf32>
    %65 = math.absf %64 : vector<16x128xf32>
    %66 = arith.addf %60, %65 : vector<16x128xf32>
    %67 = vector.extract_strided_slice %0 {offsets = [3, 0], sizes = [1, 128], strides = [1, 1]} : vector<24x128xf32> to vector<1x128xf32>
    %68 = vector.broadcast %43 : vector<16x1xf32> to vector<16x128xf32>
    %69 = vector.broadcast %67 : vector<1x128xf32> to vector<16x128xf32>
    %70 = arith.subf %68, %69 : vector<16x128xf32>
    %71 = math.absf %70 : vector<16x128xf32>
    %72 = arith.addf %66, %71 : vector<16x128xf32>
    %73 = vector.extract_strided_slice %0 {offsets = [9, 0], sizes = [1, 128], strides = [1, 1]} : vector<24x128xf32> to vector<1x128xf32>
    %74 = vector.broadcast %44 : vector<16x1xf32> to vector<16x128xf32>
    %75 = vector.broadcast %73 : vector<1x128xf32> to vector<16x128xf32>
    %76 = arith.subf %74, %75 : vector<16x128xf32>
    %77 = math.absf %76 : vector<16x128xf32>
    %78 = vector.extract_strided_slice %0 {offsets = [10, 0], sizes = [1, 128], strides = [1, 1]} : vector<24x128xf32> to vector<1x128xf32>
    %79 = vector.broadcast %45 : vector<16x1xf32> to vector<16x128xf32>
    %80 = vector.broadcast %78 : vector<1x128xf32> to vector<16x128xf32>
    %81 = arith.subf %79, %80 : vector<16x128xf32>
    %82 = math.absf %81 : vector<16x128xf32>
    %83 = arith.addf %77, %82 : vector<16x128xf32>
    %84 = vector.extract_strided_slice %0 {offsets = [11, 0], sizes = [1, 128], strides = [1, 1]} : vector<24x128xf32> to vector<1x128xf32>
    %85 = vector.broadcast %46 : vector<16x1xf32> to vector<16x128xf32>
    %86 = vector.broadcast %84 : vector<1x128xf32> to vector<16x128xf32>
    %87 = arith.subf %85, %86 : vector<16x128xf32>
    %88 = math.absf %87 : vector<16x128xf32>
    %89 = arith.addf %83, %88 : vector<16x128xf32>
    %90 = vector.extract_strided_slice %0 {offsets = [12, 0], sizes = [1, 128], strides = [1, 1]} : vector<24x128xf32> to vector<1x128xf32>
    %91 = vector.broadcast %47 : vector<16x1xf32> to vector<16x128xf32>
    %92 = vector.broadcast %90 : vector<1x128xf32> to vector<16x128xf32>
    %93 = arith.subf %91, %92 : vector<16x128xf32>
    %94 = math.absf %93 : vector<16x128xf32>
    %95 = arith.addf %89, %94 : vector<16x128xf32>
    %96 = vector.broadcast %48 : vector<1x128xf32> to vector<16x128xf32>
    %97 = arith.mulf %95, %96 : vector<16x128xf32>
    %98 = arith.maximumf %72, %97 : vector<16x128xf32>
    %cst_20 = arith.constant 5.000000e-01 : f32
    %99 = vector.broadcast %cst_20 : f32 to vector<16x1xf32>
    %100 = arith.mulf %99, %42 : vector<16x1xf32>
    %cst_21 = arith.constant 5.000000e-01 : f32
    %101 = vector.broadcast %cst_21 : f32 to vector<16x1xf32>
    %102 = arith.mulf %101, %43 : vector<16x1xf32>
    %103 = arith.subf %40, %100 : vector<16x1xf32>
    %104 = arith.subf %41, %102 : vector<16x1xf32>
    %105 = arith.addf %40, %100 : vector<16x1xf32>
    %106 = arith.addf %41, %102 : vector<16x1xf32>
    %107 = arith.mulf %42, %43 : vector<16x1xf32>
    %cst_22 = arith.constant 5.000000e-01 : f32
    %108 = vector.broadcast %cst_22 : f32 to vector<16x1xf32>
    %109 = arith.mulf %108, %46 : vector<16x1xf32>
    %cst_23 = arith.constant 5.000000e-01 : f32
    %110 = vector.broadcast %cst_23 : f32 to vector<16x1xf32>
    %111 = arith.mulf %110, %47 : vector<16x1xf32>
    %112 = arith.subf %44, %109 : vector<16x1xf32>
    %113 = arith.subf %45, %111 : vector<16x1xf32>
    %114 = arith.addf %44, %109 : vector<16x1xf32>
    %115 = arith.addf %45, %111 : vector<16x1xf32>
    %116 = arith.mulf %46, %47 : vector<16x1xf32>
    %117 = vector.extract_strided_slice %0 {offsets = [4, 0], sizes = [1, 128], strides = [1, 1]} : vector<24x128xf32> to vector<1x128xf32>
    %118 = vector.extract_strided_slice %0 {offsets = [5, 0], sizes = [1, 128], strides = [1, 1]} : vector<24x128xf32> to vector<1x128xf32>
    %119 = vector.extract_strided_slice %0 {offsets = [6, 0], sizes = [1, 128], strides = [1, 1]} : vector<24x128xf32> to vector<1x128xf32>
    %120 = vector.extract_strided_slice %0 {offsets = [7, 0], sizes = [1, 128], strides = [1, 1]} : vector<24x128xf32> to vector<1x128xf32>
    %121 = vector.extract_strided_slice %0 {offsets = [8, 0], sizes = [1, 128], strides = [1, 1]} : vector<24x128xf32> to vector<1x128xf32>
    %122 = vector.broadcast %105 : vector<16x1xf32> to vector<16x128xf32>
    %123 = vector.broadcast %119 : vector<1x128xf32> to vector<16x128xf32>
    %124 = arith.minimumf %122, %123 : vector<16x128xf32>
    %125 = vector.broadcast %103 : vector<16x1xf32> to vector<16x128xf32>
    %126 = vector.broadcast %117 : vector<1x128xf32> to vector<16x128xf32>
    %127 = arith.maximumf %125, %126 : vector<16x128xf32>
    %128 = arith.subf %124, %127 : vector<16x128xf32>
    %cst_24 = arith.constant 0.000000e+00 : f32
    %129 = vector.broadcast %cst_24 : f32 to vector<16x128xf32>
    %130 = arith.maximumf %128, %129 : vector<16x128xf32>
    %131 = vector.broadcast %106 : vector<16x1xf32> to vector<16x128xf32>
    %132 = vector.broadcast %120 : vector<1x128xf32> to vector<16x128xf32>
    %133 = arith.minimumf %131, %132 : vector<16x128xf32>
    %134 = vector.broadcast %104 : vector<16x1xf32> to vector<16x128xf32>
    %135 = vector.broadcast %118 : vector<1x128xf32> to vector<16x128xf32>
    %136 = arith.maximumf %134, %135 : vector<16x128xf32>
    %137 = arith.subf %133, %136 : vector<16x128xf32>
    %cst_25 = arith.constant 0.000000e+00 : f32
    %138 = vector.broadcast %cst_25 : f32 to vector<16x128xf32>
    %139 = arith.maximumf %137, %138 : vector<16x128xf32>
    %140 = arith.mulf %130, %139 : vector<16x128xf32>
    %141 = vector.broadcast %107 : vector<16x1xf32> to vector<16x128xf32>
    %142 = vector.broadcast %121 : vector<1x128xf32> to vector<16x128xf32>
    %143 = arith.addf %141, %142 : vector<16x128xf32>
    %144 = arith.subf %143, %140 : vector<16x128xf32>
    %cst_26 = arith.constant 9.99999971E-10 : f32
    %145 = vector.broadcast %cst_26 : f32 to vector<16x128xf32>
    %146 = arith.addf %144, %145 : vector<16x128xf32>
    %147 = tpu.reciprocal %146 {approx = true} : vector<16x128xf32> -> vector<16x128xf32>
    %148 = arith.mulf %140, %147 : vector<16x128xf32>
    %149 = vector.broadcast %105 : vector<16x1xf32> to vector<16x128xf32>
    %150 = vector.broadcast %119 : vector<1x128xf32> to vector<16x128xf32>
    %151 = arith.maximumf %149, %150 : vector<16x128xf32>
    %152 = vector.broadcast %103 : vector<16x1xf32> to vector<16x128xf32>
    %153 = vector.broadcast %117 : vector<1x128xf32> to vector<16x128xf32>
    %154 = arith.minimumf %152, %153 : vector<16x128xf32>
    %155 = arith.subf %151, %154 : vector<16x128xf32>
    %cst_27 = arith.constant 0.000000e+00 : f32
    %156 = vector.broadcast %cst_27 : f32 to vector<16x128xf32>
    %157 = arith.maximumf %155, %156 : vector<16x128xf32>
    %158 = vector.broadcast %106 : vector<16x1xf32> to vector<16x128xf32>
    %159 = vector.broadcast %120 : vector<1x128xf32> to vector<16x128xf32>
    %160 = arith.maximumf %158, %159 : vector<16x128xf32>
    %161 = vector.broadcast %104 : vector<16x1xf32> to vector<16x128xf32>
    %162 = vector.broadcast %118 : vector<1x128xf32> to vector<16x128xf32>
    %163 = arith.minimumf %161, %162 : vector<16x128xf32>
    %164 = arith.subf %160, %163 : vector<16x128xf32>
    %cst_28 = arith.constant 0.000000e+00 : f32
    %165 = vector.broadcast %cst_28 : f32 to vector<16x128xf32>
    %166 = arith.maximumf %164, %165 : vector<16x128xf32>
    %167 = arith.mulf %157, %166 : vector<16x128xf32>
    %168 = arith.subf %167, %144 : vector<16x128xf32>
    %cst_29 = arith.constant 9.99999971E-10 : f32
    %169 = vector.broadcast %cst_29 : f32 to vector<16x128xf32>
    %170 = arith.addf %167, %169 : vector<16x128xf32>
    %171 = tpu.reciprocal %170 {approx = true} : vector<16x128xf32> -> vector<16x128xf32>
    %172 = arith.mulf %168, %171 : vector<16x128xf32>
    %173 = arith.subf %148, %172 : vector<16x128xf32>
    %cst_30 = arith.constant 0.000000e+00 : f32
    %174 = vector.broadcast %cst_30 : f32 to vector<16x128xf32>
    %175 = arith.subf %174, %173 : vector<16x128xf32>
    %176 = vector.extract_strided_slice %0 {offsets = [13, 0], sizes = [1, 128], strides = [1, 1]} : vector<24x128xf32> to vector<1x128xf32>
    %177 = vector.extract_strided_slice %0 {offsets = [14, 0], sizes = [1, 128], strides = [1, 1]} : vector<24x128xf32> to vector<1x128xf32>
    %178 = vector.extract_strided_slice %0 {offsets = [15, 0], sizes = [1, 128], strides = [1, 1]} : vector<24x128xf32> to vector<1x128xf32>
    %179 = vector.extract_strided_slice %0 {offsets = [16, 0], sizes = [1, 128], strides = [1, 1]} : vector<24x128xf32> to vector<1x128xf32>
    %180 = vector.extract_strided_slice %0 {offsets = [17, 0], sizes = [1, 128], strides = [1, 1]} : vector<24x128xf32> to vector<1x128xf32>
    %181 = vector.broadcast %114 : vector<16x1xf32> to vector<16x128xf32>
    %182 = vector.broadcast %178 : vector<1x128xf32> to vector<16x128xf32>
    %183 = arith.minimumf %181, %182 : vector<16x128xf32>
    %184 = vector.broadcast %112 : vector<16x1xf32> to vector<16x128xf32>
    %185 = vector.broadcast %176 : vector<1x128xf32> to vector<16x128xf32>
    %186 = arith.maximumf %184, %185 : vector<16x128xf32>
    %187 = arith.subf %183, %186 : vector<16x128xf32>
    %cst_31 = arith.constant 0.000000e+00 : f32
    %188 = vector.broadcast %cst_31 : f32 to vector<16x128xf32>
    %189 = arith.maximumf %187, %188 : vector<16x128xf32>
    %190 = vector.broadcast %115 : vector<16x1xf32> to vector<16x128xf32>
    %191 = vector.broadcast %179 : vector<1x128xf32> to vector<16x128xf32>
    %192 = arith.minimumf %190, %191 : vector<16x128xf32>
    %193 = vector.broadcast %113 : vector<16x1xf32> to vector<16x128xf32>
    %194 = vector.broadcast %177 : vector<1x128xf32> to vector<16x128xf32>
    %195 = arith.maximumf %193, %194 : vector<16x128xf32>
    %196 = arith.subf %192, %195 : vector<16x128xf32>
    %cst_32 = arith.constant 0.000000e+00 : f32
    %197 = vector.broadcast %cst_32 : f32 to vector<16x128xf32>
    %198 = arith.maximumf %196, %197 : vector<16x128xf32>
    %199 = arith.mulf %189, %198 : vector<16x128xf32>
    %200 = vector.broadcast %116 : vector<16x1xf32> to vector<16x128xf32>
    %201 = vector.broadcast %180 : vector<1x128xf32> to vector<16x128xf32>
    %202 = arith.addf %200, %201 : vector<16x128xf32>
    %203 = arith.subf %202, %199 : vector<16x128xf32>
    %cst_33 = arith.constant 9.99999971E-10 : f32
    %204 = vector.broadcast %cst_33 : f32 to vector<16x128xf32>
    %205 = arith.addf %203, %204 : vector<16x128xf32>
    %206 = tpu.reciprocal %205 {approx = true} : vector<16x128xf32> -> vector<16x128xf32>
    %207 = arith.mulf %199, %206 : vector<16x128xf32>
    %208 = vector.broadcast %114 : vector<16x1xf32> to vector<16x128xf32>
    %209 = vector.broadcast %178 : vector<1x128xf32> to vector<16x128xf32>
    %210 = arith.maximumf %208, %209 : vector<16x128xf32>
    %211 = vector.broadcast %112 : vector<16x1xf32> to vector<16x128xf32>
    %212 = vector.broadcast %176 : vector<1x128xf32> to vector<16x128xf32>
    %213 = arith.minimumf %211, %212 : vector<16x128xf32>
    %214 = arith.subf %210, %213 : vector<16x128xf32>
    %cst_34 = arith.constant 0.000000e+00 : f32
    %215 = vector.broadcast %cst_34 : f32 to vector<16x128xf32>
    %216 = arith.maximumf %214, %215 : vector<16x128xf32>
    %217 = vector.broadcast %115 : vector<16x1xf32> to vector<16x128xf32>
    %218 = vector.broadcast %179 : vector<1x128xf32> to vector<16x128xf32>
    %219 = arith.maximumf %217, %218 : vector<16x128xf32>
    %220 = vector.broadcast %113 : vector<16x1xf32> to vector<16x128xf32>
    %221 = vector.broadcast %177 : vector<1x128xf32> to vector<16x128xf32>
    %222 = arith.minimumf %220, %221 : vector<16x128xf32>
    %223 = arith.subf %219, %222 : vector<16x128xf32>
    %cst_35 = arith.constant 0.000000e+00 : f32
    %224 = vector.broadcast %cst_35 : f32 to vector<16x128xf32>
    %225 = arith.maximumf %223, %224 : vector<16x128xf32>
    %226 = arith.mulf %216, %225 : vector<16x128xf32>
    %227 = arith.subf %226, %203 : vector<16x128xf32>
    %cst_36 = arith.constant 9.99999971E-10 : f32
    %228 = vector.broadcast %cst_36 : f32 to vector<16x128xf32>
    %229 = arith.addf %226, %228 : vector<16x128xf32>
    %230 = tpu.reciprocal %229 {approx = true} : vector<16x128xf32> -> vector<16x128xf32>
    %231 = arith.mulf %227, %230 : vector<16x128xf32>
    %232 = arith.subf %207, %231 : vector<16x128xf32>
    %cst_37 = arith.constant 0.000000e+00 : f32
    %233 = vector.broadcast %cst_37 : f32 to vector<16x128xf32>
    %234 = arith.subf %233, %232 : vector<16x128xf32>
    %235 = vector.broadcast %49 : vector<1x128xf32> to vector<16x128xf32>
    %236 = arith.mulf %175, %235 : vector<16x128xf32>
    %237 = arith.addf %234, %236 : vector<16x128xf32>
    %238 = arith.maximumf %175, %237 : vector<16x128xf32>
    %cst_38 = arith.constant 1.000000e+00 : f32
    %239 = vector.broadcast %cst_38 : f32 to vector<16x128xf32>
    %240 = arith.mulf %239, %98 : vector<16x128xf32>
    %241 = arith.addf %21, %240 : vector<16x128xf32>
    %cst_39 = arith.constant 1.000000e+00 : f32
    %242 = vector.broadcast %cst_39 : f32 to vector<16x128xf32>
    %243 = arith.mulf %242, %238 : vector<16x128xf32>
    %244 = arith.addf %241, %243 : vector<16x128xf32>
    %cst_40 = arith.constant 1.000000e+00 : f32
    %245 = vector.broadcast %cst_40 : f32 to vector<16x128xf32>
    %246 = arith.mulf %245, %37 : vector<16x128xf32>
    %247 = arith.addf %244, %246 : vector<16x128xf32>
    %c0_41 = arith.constant 0 : index
    %c0_42 = arith.constant 0 : index
    %248 = vector.load %arg8[%c0_41, %c0_42] : memref<16x128xf32, #tpu.memory_space<vmem>>, vector<16x128xf32>
    tpu.vector_store %arg8[%c0_41, %c0_42], %247 {strides = array<i32>} : memref<16x128xf32, #tpu.memory_space<vmem>>, vector<16x128xf32>,
    return
  }
  func.func @transform_0(%arg0: i32) -> (i32, i32) {
    %c0_i32 = arith.constant 0 : i32
    %c0_i32_0 = arith.constant 0 : i32
    return %arg0, %c0_i32 : i32, i32
  }
  func.func @transform_1(%arg0: i32) -> (i32, i32) {
    %c0_i32 = arith.constant 0 : i32
    %c0_i32_0 = arith.constant 0 : i32
    return %arg0, %c0_i32 : i32, i32
  }
  func.func @transform_2(%arg0: i32) -> (i32, i32) {
    %c0_i32 = arith.constant 0 : i32
    %c0_i32_0 = arith.constant 0 : i32
    return %arg0, %c0_i32 : i32, i32
  }
  func.func @transform_3(%arg0: i32) -> (i32, i32) {
    %c0_i32 = arith.constant 0 : i32
    %c0_i32_0 = arith.constant 0 : i32
    return %arg0, %c0_i32 : i32, i32
  }
  func.func @transform_4(%arg0: i32) -> (i32, i32) {
    %c0_i32 = arith.constant 0 : i32
    %c0_i32_0 = arith.constant 0 : i32
    %c0_i32_1 = arith.constant 0 : i32
    return %c0_i32, %c0_i32_0 : i32, i32
  }
  func.func @transform_5(%arg0: i32) -> (i32, i32) {
    %c0_i32 = arith.constant 0 : i32
    %c0_i32_0 = arith.constant 0 : i32
    %c0_i32_1 = arith.constant 0 : i32
    return %c0_i32, %c0_i32_0 : i32, i32
  }
  func.func @transform_6(%arg0: i32) -> (i32, i32) {
    %c0_i32 = arith.constant 0 : i32
    %c0_i32_0 = arith.constant 0 : i32
    %c0_i32_1 = arith.constant 0 : i32
    return %c0_i32, %c0_i32_0 : i32, i32
  }
  func.func @transform_7(%arg0: i32) -> (i32, i32) {
    %c0_i32 = arith.constant 0 : i32
    %c0_i32_0 = arith.constant 0 : i32
    return %arg0, %c0_i32 : i32, i32
  }
}

</mosaic_0001>

<bundles_post_ra>
// kernel: tpu_custom_call.1
= control target key start
LH: loop header
LB: loop body
LE: loop exit
PB: predicated region body
PF: predicated region fallthrough
CT: control target
= control target key end

     0   :  { %vm45_vm0 = vcmask 130048   ;;  %v1006_v2 = vmov 0.0   ;;  %vm193_vm1 = vcmask 64512   ;;  %s1007_s30 = smov 126   ;;  %vm1008_vm2 = vmmov 0   ;;  %s1513_s0 = inlined_call_operand.vmem [shape: f32[16,16], index: 0, kind: input, shape index: {}]   ;;  %s1514_s1 = inlined_call_operand.vmem [shape: f32[16,8], index: 1, kind: input, shape index: {}]   ;;  %s1515_s2 = inlined_call_operand.vmem [shape: f32[16,4], index: 2, kind: input, shape index: {}]   ;;  %s1516_s3 = inlined_call_operand.vmem [shape: f32[16,4], index: 3, kind: input, shape index: {}]   ;;  %s1517_s4 = inlined_call_operand.vmem [shape: bf16[128,16], index: 4, kind: input, shape index: {}]   ;;  %s1518_s5 = inlined_call_operand.vmem [shape: bf16[128,8], index: 5, kind: input, shape index: {}]   ;;  %s1519_s6 = inlined_call_operand.vmem [shape: f32[24,128], index: 6, kind: input, shape index: {}]   ;;  %s1520_s7 = inlined_call_operand.hbm [shape: f32[16,128], index: 7, kind: output, shape index: {}]  }
   0x1   :  { %v1060_v0 = vld [vmem:[%s1515_s2] sm:$0xff]  ;;  %863 = vmatprep.subr.bf16.mxu0 %v1006_v2  ;;  %v1070_v4 = vld [vmem:[%s1515_s2 + $0x8] sm:$0xff]  ;;  %883 = vmatprep.subr.bf16.mxu1 %v1006_v2  ;;  %v936_v17 = vld [vmem:[%s1517_s4 + $0x10] sm:$0xff]   ;;  %v1009_v18 = vmov 1  }
   0x2   :  { %v499_v1 = vmul.f32 0.5, %v1060_v0  ;;  %v934_v3 = vld [vmem:[%s1517_s4] sm:$0xff]   ;;  %v500_v6 = vmul.f32 0.5, %v1070_v4  ;;  %v1084_v8 = vld [vmem:[%s1514_s1 + $0x8] sm:$0xff]  ;;  %879 = vmatprep.mubr.msk.bf16.mxu0 %vm1008_vm2, %v1006_v2  ;;  %899 = vmatprep.mubr.msk.bf16.mxu1 %vm1008_vm2, %v1006_v2  ;;  %v123_v21 = vsel %vm45_vm0, %v936_v17, 0 }
   0x3   :  { %v117_v5 = vsel %vm45_vm0, %v934_v3, 0  ;;  %v1079_v7 = vld [vmem:[%s1514_s1] sm:$0xff]  ;;  %v935_v9 = vld [vmem:[%s1517_s4 + $0x8] sm:$0xff]   ;;  %v197_v11 = vsel %vm193_vm1, %v1084_v8, -inf  ;;  %915 = vset.pattern.permute.xlu0 %v1009_v18  ;;  %914 = vset.pattern.permute.xlu1 %v1009_v18 }
   0x4   :  { %503 = vrot.lane.b32.xlu1 %v499_v1, %s1007_s30  ;;  %864 = vmatpush3.bf16.xpose.msra.mxu0 %v117_v5  ;;  %v194_v10 = vsel %vm193_vm1, %v1079_v7, -inf  ;;  %v31_v12 = vld [vmem:[%s1513_s0] sm:$0xff]  ;;  %v32_v14 = vld [vmem:[%s1513_s0 + $0x8] sm:$0xff]  ;;  %v120_v15 = vsel %vm45_vm0, %v935_v9, 0 }
   0x5   :  { %865 = vmatprep.subr.bf16.mxu0 %v1006_v2  ;;  %195 = vmax.xlane.f32.xlu0 %v194_v10  ;;  %v825_v13 = vmul.f32 -1.442695, %v31_v12  ;;  %v826_v16 = vmul.f32 -1.442695, %v32_v14  ;;  %v942_v19 = vld [vmem:[%s1518_s5] sm:$0xff]   ;;  %v943_v22 = vld [vmem:[%s1518_s5 + $0x8] sm:$0xff]  }
   0x6   :  { %v273_v20 = vsel %vm193_vm1, %v942_v19, 0 }
   0x7   :  { %950 = vpow2.f32 %v825_v13  ;;  %884 = vmatpush3.bf16.xpose.msra.mxu1 %v273_v20 }
   0x8   :  { %505 = vrot.lane.b32.xlu1 %v500_v6, %s1007_s30  ;;  %952 = vpow2.f32 %v826_v16  ;;  %885 = vmatprep.subr.bf16.mxu1 %v1006_v2 }
   0x9   :  { %198 = vmax.xlane.f32.xlu0 %v197_v11 }
   0xc   :  { %866 = vmatpush3.bf16.xpose.msra.mxu0 %v120_v15 }
   0xd   :  { %867 = vmatprep.subr.bf16.mxu0 %v1006_v2 }
  0x11   :  { %v951_v23 = vpop.eup %950 }
  0x14   :  { %868 = vmatpush3.bf16.xpose.msra.mxu0 %v123_v21 }
  0x15   :  { %12 = vsyncpa [#allocation3], 0  ;;  %869 = vmatprep.subr.bf16.mxu0 %v1006_v2  ;;  %v937_v24 = vld [vmem:[%s1517_s4 + $0x18] sm:$0xff]   ;;  %v276_v25 = vsel %vm193_vm1, %v943_v22, 0  ;;  %v39_v26 = vadd.f32 1.0, %v951_v23  ;;  %v953_v27 = vpop.eup %952  ;;  %v944_v29 = vld [vmem:[%s1518_s5 + $0x10] sm:$0xff]   ;;  %v69_v13 = vlaneseq }
  0x16   :  { %886 = vmatpush3.bf16.xpose.msra.mxu1 %v276_v25  ;;  %v126_v28 = vsel %vm45_vm0, %v937_v24, 0  ;;  %v40_v30 = vadd.f32 1.0, %v953_v27  ;;  %v938_v31 = vld [vmem:[%s1517_s4 + $0x20] sm:$0xff]   ;;  %v279_v32 = vsel %vm193_vm1, %v944_v29, 0  ;;  %v945_v34 = vld [vmem:[%s1518_s5 + $0x18] sm:$0xff]   ;;  %v1010_v35 = vmov 3  }
  0x17   :  { %887 = vmatprep.subr.bf16.mxu1 %v1006_v2  ;;  %954 = vrcp.f32 %v39_v26  ;;  %v129_v33 = vsel %vm45_vm0, %v938_v31, 0  ;;  %v939_v37 = vld [vmem:[%s1517_s4 + $0x28] sm:$0xff]   ;;  %v282_v38 = vsel %vm193_vm1, %v945_v34, 0  ;;  %v1011_v42 = vmov 0   ;;  %v946_v43 = vld [vmem:[%s1518_s5 + $0x20] sm:$0xff]   ;;  %v940_v45 = vld [vmem:[%s1517_s4 + $0x30] sm:$0xff]  }
  0x18   :  { %956 = vrcp.f32 %v40_v30  ;;  %v132_v41 = vsel %vm45_vm0, %v939_v37, 0  ;;  %v285_v46 = vsel %vm193_vm1, %v946_v43, 0  ;;  %v135_v47 = vsel %vm45_vm0, %v940_v45, 0  ;;  %v1166_v48 = vld [vmem:[%s1516_s3 + $0x8] sm:$0xff]  ;;  %v941_v50 = vld [vmem:[%s1517_s4 + $0x38] sm:$0xff]   ;;  %v1182_v53 = vld [vmem:[%s1516_s3] sm:$0xff] }
  0x19   :  { %v947_v49 = vld [vmem:[%s1518_s5 + $0x28] sm:$0xff]   ;;  %v138_v52 = vsel %vm45_vm0, %v941_v50, 0  ;;  %v948_v54 = vld [vmem:[%s1518_s5 + $0x30] sm:$0xff]   ;;  %v521_v55 = vmul.f32 0.5, %v1182_v53  ;;  %v522_v58 = vmul.f32 0.5, %v1166_v48  ;;  %v949_v59 = vld [vmem:[%s1518_s5 + $0x38] sm:$0xff]  }
  0x1a   :  { %v288_v51 = vsel %vm193_vm1, %v947_v49, 0  ;;  %v291_v56 = vsel %vm193_vm1, %v948_v54, 0  ;;  %v294_v60 = vsel %vm193_vm1, %v949_v59, 0  ;;  %s1012_s20 = smov 127   ;;  %v1013_v61 = vmov 2  }
  0x1b   :  { %v1228_v15 = vshrl.u32 %v69_v13, 7 }
  0x1c   :  { %870 = vmatpush3.bf16.xpose.msra.mxu0 %v126_v28 }
  0x1d   :  { %871 = vmatprep.subr.bf16.mxu0 %v1006_v2  ;;  %v1233_v17 = vsub.s32 1, %v1228_v15  ;;  %v1249_v22 = vsub.s32 0, %v1228_v15 }
  0x1e   :  { %888 = vmatpush3.bf16.xpose.msra.mxu1 %v279_v32 }
  0x1f   :  { %370 = vperm.xlu0 %915, %v1070_v4   ;;  %889 = vmatprep.subr.bf16.mxu1 %v1006_v2 }
  0x21   :  { %v955_v36 = vpop.eup %954 }
  0x22   :  { %v46_v39 = vsel %vm45_vm0, %v955_v36, 0.0  ;;  %v957_v40 = vpop.eup %956 }
  0x23   :  { %917 = vset.pattern.permute.xlu0 %v1010_v35  ;;  %v49_v44 = vsel %vm45_vm0, %v957_v40, 0.0  ;;  %v52_v57 = vpack.c.bf16 %v957_v40, %v955_v36 }
  0x24   :  { %872 = vmatpush3.bf16.xpose.msra.mxu0 %v129_v33  ;;  %402 = vperm.xlu0 %917, %v1060_v0  }
  0x25   :  { %873 = vmatprep.subr.bf16.mxu0 %v1006_v2 }
  0x26   :  { %890 = vmatpush3.bf16.xpose.msra.mxu1 %v282_v38 }
  0x27   :  { %891 = vmatprep.subr.bf16.mxu1 %v1006_v2 }
  0x28   :  { %918 = vset.pattern.permute.xlu0 %v1011_v42 }
  0x29   :  { %349 = vperm.xlu0 %918, %v1060_v0  }
  0x2c   :  { %47 = vadd.xlane.f32.xlu1 %v46_v39  ;;  %874 = vmatpush3.bf16.xpose.msra.mxu0 %v132_v41 }
  0x2d   :  { %875 = vmatprep.subr.bf16.mxu0 %v1006_v2  ;;  %354 = vperm.xlu0 %918, %v1070_v4  }
  0x2e   :  { %892 = vmatpush3.bf16.xpose.msra.mxu1 %v285_v46 }
  0x2f   :  { %893 = vmatprep.subr.bf16.mxu1 %v1006_v2 }
  0x30   :  { %50 = vadd.xlane.f32.xlu1 %v49_v44 }
  0x31   :  { %426 = vperm.xlu0 %918, %v1166_v48  }
  0x34   :  { %876 = vmatpush3.bf16.xpose.msra.mxu0 %v135_v47 }
  0x35   :  { %877 = vmatprep.subr.bf16.mxu0 %v1006_v2 }
  0x36   :  { %894 = vmatpush3.bf16.xpose.msra.mxu1 %v288_v51 }
  0x37   :  { %895 = vmatprep.subr.bf16.mxu1 %v1006_v2 }
  0x3c   :  { %878 = vmatpush3.bf16.xpose.msra.mxu0 %v138_v52 }
  0x3e   :  { %896 = vmatpush3.bf16.xpose.msra.mxu1 %v291_v56 }
  0x3f   :  { %897 = vmatprep.subr.bf16.mxu1 %v1006_v2 }
  0x41   :  { %525 = vrot.lane.b32.xlu1 %v521_v55, %s1007_s30 }
  0x43   :  { %880 = vmatmul.mubr.msk.bf16.vlgmr.msra.gmra.mrb[0].mxu0 %vm45_vm0, %v52_v57 }
  0x45   :  { %527 = vrot.lane.b32.xlu1 %v522_v58, %s1007_s30 }
  0x46   :  { %898 = vmatpush3.bf16.xpose.msra.mxu1 %v294_v60  ;;  %v1277_v60 = vsub.s32 3, %v1228_v15 }
  0x49   :  { %513 = vrot.lane.b32.xlu1 %v1060_v0, %s1012_s20 }
  0x4d   :  { %515 = vrot.lane.b32.xlu1 %v1070_v4, %s1012_s20 }
  0x51   :  { %535 = vrot.lane.b32.xlu1 %v1182_v53, %s1012_s20 }
  0x55   :  { %537 = vrot.lane.b32.xlu1 %v1166_v48, %s1012_s20 }
  0x59   :  { %366 = vperm.xlu1 %914, %v1060_v0  }
  0x5d   :  { %916 = vset.pattern.permute.xlu1 %v1013_v61 }
  0x5e   :  { %384 = vperm.xlu1 %916, %v1060_v0  }
  0x62   :  { %388 = vperm.xlu1 %916, %v1070_v4  }
  0x66   :  { %919 = vset.pattern.permute.xlu1 %v1010_v35 }
  0x67   :  { %406 = vperm.xlu1 %919, %v1070_v4  }
  0x6b   :  { %920 = vset.pattern.permute.xlu1 %v1011_v42 }
  0x6c   :  { %421 = vperm.xlu1 %920, %v1182_v53  }
  0x70   :  { %921 = vset.pattern.permute.xlu1 %v1013_v61 }
  0x76   :  { %v504_v62 = vpop.permute.xlu1 %503 }
  0x77   :  { %v1213_v63 = vsub.f32 %v1060_v0, %v504_v62  ;;  %v511_v1 = vadd.f32 %v504_v62, %v1060_v0 }
  0x79   :  { %561 = vperm.xlu0 %918, %v1213_v63  }
  0x7a   :  { %v1217_v2 = vpop.permute.xlu1 %505 }
  0x7b   :  { %v1222_v3 = vsub.f32 %v1070_v4, %v1217_v2  ;;  %v512_v54 = vadd.f32 %v1217_v2, %v1070_v4 }
  0x7d   :  { %923 = vset.pattern.permute.xlu0 %v1009_v18 }
  0x7e   :  { %580 = vperm.xlu0 %923, %v511_v1  }
  0x82   :  { %598 = vperm.xlu0 %923, %v1222_v3  }
  0x86   :  { %926 = vset.pattern.permute.xlu0 %v1011_v42 }
  0x92   :  { %v196_v5 = vpop.xlane.xlu0 %195 }
  0x93   :  { %v200_v6 = vsub.f32 %v1079_v7, %v196_v5 }
  0x95   :  { %v202_v9 = vmul.f32 1.442695, %v200_v6 }
  0x96   :  { %v199_v10 = vpop.xlane.xlu0 %198 }
  0x97   :  { %v201_v11 = vsub.f32 %v1084_v8, %v199_v10  ;;  %958 = vpow2.f32 %v202_v9  ;;  %v1244_v8 = vld [vmem:[%s1519_s6] sm:$0xff] }
  0x98   :  { %v376_v21 = vrot.slane %v1244_v8, %v1233_v17  ;;  %v360_v25 = vrot.slane %v1244_v8, %v1249_v22 }
  0x99   :  { %v204_v12 = vmul.f32 1.442695, %v201_v11 }
  0x9b   :  { %960 = vpow2.f32 %v204_v12 }
  0x9e   :  { %v371_v14 = vpop.permute.xlu0 %370 }
  0x9f   :  { %v378_v24 = vsub.f32 %v371_v14, %v376_v21 }
  0xa1   :  { %v1230_v16 = vpop.eup %958  ;;  %v380_v27 = vand.u32 2147483647, %v378_v24 }
  0xa2   :  { %v206_v13 = vsel %vm193_vm1, %v1230_v16, 0.0 }
  0xa3   :  { %v1235_v19 = vpop.permute.xlu0 %402 }
  0xa5   :  { %v1237_v20 = vpop.eup %960 }
  0xa6   :  { %v212_v7 = vpack.c.bf16 %v1237_v20, %v1230_v16  ;;  %v1311_v16 = vsub.s32 4, %v1228_v15 }
  0xa8   :  { %900 = vmatmul.mubr.msk.bf16.vlgmr.msra.gmra.mrb[0].mxu1 %vm193_vm1, %v212_v7  ;;  %v350_v23 = vpop.permute.xlu0 %349 }
  0xa9   :  { %v361_v46 = vsub.f32 %v350_v23, %v360_v25 }
  0xab   :  { %v363_v50 = vand.u32 2147483647, %v361_v46 }
  0xac   :  { %v355_v26 = vpop.permute.xlu0 %354 }
  0xad   :  { %v362_v28 = vsub.f32 %v355_v26, %v360_v25 }
  0xaf   :  { %v364_v29 = vand.u32 2147483647, %v362_v28 }
  0xb1   :  { %v382_v30 = vadd.f32 %v380_v27, %v364_v29  ;;  %v209_v29 = vsel %vm193_vm1, %v1237_v20, 0.0 }
  0xb9   :  { %v1254_v31 = vpop.xlane.xlu1 %47 }
  0xbd   :  { %v1256_v32 = vpop.xlane.xlu1 %50 }
  0xc1   :  { %v526_v33 = vpop.permute.xlu1 %525 }
  0xc2   :  { %v533_v39 = vadd.f32 %v526_v33, %v1182_v53  ;;  %v531_v12 = vsub.f32 %v1182_v53, %v526_v33 }
  0xc5   :  { %v528_v34 = vpop.permute.xlu1 %527 }
  0xc6   :  { %v534_v36 = vadd.f32 %v528_v34, %v1166_v48  ;;  %v532_v44 = vsub.f32 %v1166_v48, %v528_v34 }
  0xc8   :  { %674 = vperm.xlu0 %926, %v534_v36  }
  0xc9   :  { %v514_v37 = vpop.permute.xlu1 %513 }
  0xca   :  { %v519_v38 = vmul.f32 %v514_v37, %v1060_v0  ;;  %v1266_v0 = vsub.s32 2, %v1228_v15 }
  0xcc   :  { %927 = vset.pattern.permute.xlu0 %v1009_v18  ;;  %615 = vperm.xlu1 %921, %v519_v38   ;;  %v394_v52 = vrot.slane %v1244_v8, %v1266_v0 }
  0xcd   :  { %704 = vperm.xlu0 %927, %v533_v39   ;;  %v516_v40 = vpop.permute.xlu1 %515 }
  0xce   :  { %v520_v47 = vmul.f32 %v516_v40, %v1070_v4  ;;  %v1284_v4 = vrot.slane %v1244_v8, %v1277_v60 }
  0xd1   :  { %438 = vperm.xlu0 %927, %v1182_v53   ;;  %v536_v41 = vpop.permute.xlu1 %535 }
  0xd2   :  { %v541_v43 = vmul.f32 %v536_v41, %v1182_v53 }
  0xd4   :  { %739 = vperm.xlu1 %921, %v541_v43   ;;  %v555_v43 = vsub.s32 6, %v1228_v15 }
  0xd5   :  { %722 = vperm.xlu0 %927, %v532_v44   ;;  %v538_v45 = vpop.permute.xlu1 %537 }
  0xd6   :  { %v542_v14 = vmul.f32 %v538_v45, %v1166_v48  ;;  %v589_v45 = vsub.s32 7, %v1228_v15 }
  0xd8   :  { %922 = vset.pattern.permute.xlu1 %v1011_v42 }
  0xd9   :  { %930 = vset.pattern.permute.xlu0 %v1013_v61  ;;  %545 = vperm.xlu1 %922, %v511_v1   ;;  %v367_v49 = vpop.permute.xlu1 %366 }
  0xda   :  { %620 = vperm.xlu0 %930, %v520_v47   ;;  %v377_v51 = vsub.f32 %v367_v49, %v376_v21 }
  0xdc   :  { %v379_v55 = vand.u32 2147483647, %v377_v51 }
  0xdd   :  { %550 = vperm.xlu1 %922, %v512_v54   ;;  %v385_v56 = vpop.permute.xlu1 %384 }
  0xde   :  { %v381_v57 = vadd.f32 %v379_v55, %v363_v50  ;;  %v395_v58 = vsub.f32 %v385_v56, %v394_v52 }
  0xe0   :  { %v397_v59 = vand.u32 2147483647, %v395_v58 }
  0xe1   :  { %566 = vperm.xlu1 %922, %v1222_v3   ;;  %v389_v62 = vpop.permute.xlu1 %388 }
  0xe2   :  { %v1279_v1 = vadd.f32 %v397_v59, %v381_v57  ;;  %v396_v5 = vsub.f32 %v389_v62, %v394_v52  ;;  %v590_v57 = vrot.slane %v1244_v8, %v589_v45 }
  0xe4   :  { %v398_v6 = vand.u32 2147483647, %v396_v5 }
  0xe5   :  { %924 = vset.pattern.permute.xlu1 %v1009_v18 }
  0xe6   :  { %584 = vperm.xlu1 %924, %v512_v54   ;;  %v400_v2 = vadd.f32 %v398_v6, %v382_v30  ;;  %v407_v9 = vpop.permute.xlu1 %406  ;;  %v1335_v30 = vpop.permute.xlu0 %426 }
  0xe7   :  { %v414_v10 = vsub.f32 %v407_v9, %v1284_v4 }
  0xe9   :  { %v416_v3 = vand.u32 2147483647, %v414_v10 }
  0xea   :  { %594 = vperm.xlu1 %924, %v1213_v63   ;;  %v1308_v63 = vld [vmem:[%s1519_s6 + $0x10] sm:$0xff] }
  0xeb   :  { %v1288_v11 = vadd.f32 %v416_v3, %v400_v2  ;;  %v1369_v2 = vld [vmem:[%s1519_s6 + $0x8] sm:$0xff]  ;;  %s1014_s6 = smov [#allocation2]  }
  0xec   :  { %v626_v3 = vrot.slane %v1369_v2, %v1249_v22  ;;  %s814_s25 = sshll.u32 %s1014_s6, 4  ;;  %s815_s25 = int_to_ptr.vmem [resolvable:$true] %s814_s25 }
  0xed   :  { %s982_s26 = scalar_lea.vmem %s815_s25, 256  ;;  %p987_p1 = scmp.lt.s32.totalorder %s815_s25, %s815_s25 }
  0xee   :  { %925 = vset.pattern.permute.xlu1 %v1011_v42  ;;  %v1303_v42 = vsub.s32 5, %v1228_v15  ;;  %p983_p0 = scmp.ne.s32.totalorder %s815_s25, %s982_s26  ;;  %p988_p2 = scmp.lt.s32.totalorder %s982_s26, %s982_s26 }
  0xef   :  { %669 = vperm.xlu1 %925, %v533_v39  }
  0xf0   :  { %v604_v52 = vrot.slane %v1244_v8, %v1303_v42  ;;  %p989_p3 = por %p988_p2, %p987_p1 }
  0xf2   :  { %p990_p4 = pnand %p989_p3, %p983_p0 }
  0xf3   :  { %685 = vperm.xlu1 %925, %v531_v12  }
  0xf7   :  { %690 = vperm.xlu1 %925, %v532_v44   ;;  %v572_v44 = vrot.slane %v1244_v8, %v1311_v16 }
  0xf9   :  { %207 = vadd.xlane.f32.xlu0 %v206_v13 }
  0xfb   :  { %928 = vset.pattern.permute.xlu1 %v1009_v18 }
  0xfc   :  { %708 = vperm.xlu1 %928, %v534_v36  }
 0x100   :  { %718 = vperm.xlu1 %928, %v531_v12  }
 0x104   :  { %929 = vset.pattern.permute.xlu1 %v1013_v61 }
 0x105   :  { %744 = vperm.xlu1 %929, %v542_v14  }
 0x109   :  { %931 = vset.pattern.permute.xlu1 %v1009_v18  ;;  %v184_v18 = vrot.slane %v1308_v63, %v1303_v42 }
 0x10a   :  { %442 = vperm.xlu1 %931, %v1166_v48  }
 0x10b   :  { %v1320_v21 = vmul.f32 %v184_v18, %v1254_v31  ;;  %v1325_v26 = vmul.f32 %v184_v18, %v1256_v32  ;;  %v1337_v31 = vpop.permute.xlu0 %561  ;;  %v1341_v32 = vpop.permute.xlu1 %421 }
 0x10e   :  { %932 = vset.pattern.permute.xlu1 %v1013_v61  ;;  %v72_v61 = vrot.slane %v1308_v63, %v1311_v16 }
 0x10f   :  { %460 = vperm.xlu0 %930, %v1166_v48   ;;  %456 = vperm.xlu1 %932, %v1182_v53   ;;  %v1339_v33 = vpop.permute.xlu0 %580 }
 0x113   :  { %933 = vset.pattern.permute.xlu1 %v1010_v35  ;;  %v599_v34 = vpop.permute.xlu0 %598 }
 0x114   :  { %474 = vperm.xlu1 %933, %v1182_v53   ;;  %v606_v59 = vmax.f32 %v599_v34, %v604_v52  ;;  %v648_v62 = vmin.f32 %v599_v34, %v604_v52 }
 0x116   :  { %v174_v7 = vpop.f32.mrb[0].mxu0 }
 0x117   :  { %v1322_v23 = vadd.f32 %v174_v7, %v72_v61  ;;  %v881_v24 = vpop.f32.mrb[1].mxu0 }
 0x118   :  { %v177_v25 = vpop.f32.mrb[2].mxu0 }
 0x119   :  { %v187_v35 = vsub.f32 %v1322_v23, %v1320_v21  ;;  %v1329_v27 = vadd.f32 %v177_v25, %v72_v61  ;;  %v882_v53 = vpop.f32.mrb[3].mxu0  ;;  %v591_v25 = vmin.f32 %v1339_v33, %v590_v57 }
 0x11b   :  { %v188_v28 = vsub.f32 %v1329_v27, %v1325_v26 }
 0x138   :  { %210 = vadd.xlane.f32.xlu1 %v209_v29 }
 0x147   :  { %v1346_v37 = vpop.permute.xlu0 %674 }
 0x149   :  { %478 = vperm.xlu1 %933, %v1166_v48   ;;  %v556_v48 = vrot.slane %v1244_v8, %v555_v43 }
 0x14b   :  { %v1344_v36 = vpop.permute.xlu1 %615 }
 0x14c   :  { %v1350_v39 = vpop.permute.xlu0 %704 }
 0x150   :  { %v1352_v41 = vpop.permute.xlu0 %438 }
 0x153   :  { %v1348_v38 = vpop.permute.xlu1 %739 }
 0x154   :  { %v1363_v54 = vpop.permute.xlu0 %722 }
 0x158   :  { %v546_v20 = vpop.permute.xlu1 %545 }
 0x159   :  { %v621_v12 = vpop.permute.xlu0 %620  ;;  %v557_v24 = vmin.f32 %v546_v20, %v556_v48 }
 0x15a   :  { %v628_v53 = vadd.f32 %v626_v3, %v621_v12 }
 0x15c   :  { %v551_v40 = vpop.permute.xlu1 %550 }
 0x15d   :  { %v558_v47 = vmin.f32 %v551_v40, %v556_v48  ;;  %v638_v49 = vmax.f32 %v551_v40, %v556_v48  ;;  %v573_v40 = vmax.f32 %v1337_v31, %v572_v44 }
 0x160   :  { %v567_v46 = vpop.permute.xlu1 %566 }
 0x161   :  { %v574_v50 = vmax.f32 %v567_v46, %v572_v44  ;;  %v640_v51 = vmin.f32 %v567_v46, %v572_v44 }
 0x163   :  { %v576_v55 = vsub.f32 %v558_v47, %v574_v50  ;;  %v642_v56 = vsub.f32 %v638_v49, %v640_v51  ;;  %v575_v51 = vsub.f32 %v557_v24, %v573_v40  ;;  %v1393_v24 = vrot.slane %v1308_v63, %v1249_v22 }
 0x165   :  { %v585_v58 = vpop.permute.xlu1 %584  ;;  %v578_v13 = vmax.f32 %v576_v55, 0.0  ;;  %v644_v18 = vmax.f32 %v642_v56, 0.0 }
 0x166   :  { %v592_v5 = vmin.f32 %v585_v58, %v590_v57  ;;  %v646_v6 = vmax.f32 %v585_v58, %v590_v57 }
 0x168   :  { %v608_v9 = vsub.f32 %v592_v5, %v606_v59  ;;  %v650_v10 = vsub.f32 %v646_v6, %v648_v62  ;;  %v645_v59 = vmax.f32 %v1339_v33, %v590_v57  ;;  %v637_v62 = vmax.f32 %v546_v20, %v556_v48 }
 0x169   :  { %v595_v14 = vpop.permute.xlu1 %594 }
 0x16a   :  { %v610_v8 = vmax.f32 %v608_v9, 0.0  ;;  %v652_v61 = vmax.f32 %v650_v10, 0.0  ;;  %v605_v7 = vmax.f32 %v595_v14, %v604_v52  ;;  %v647_v56 = vmin.f32 %v595_v14, %v604_v52 }
 0x16b   :  { %v639_v9 = vmin.f32 %v1337_v31, %v572_v44  ;;  %v577_v10 = vmax.f32 %v575_v51, 0.0  ;;  %v1382_v52 = vrot.slane %v1369_v2, %v1303_v42  ;;  %v1389_v44 = vrot.slane %v1369_v2, %v589_v45 }
 0x16c   :  { %v612_v29 = vmul.f32 %v610_v8, %v578_v13  ;;  %v654_v34 = vmul.f32 %v652_v61, %v644_v18  ;;  %v607_v49 = vsub.f32 %v591_v25, %v605_v7  ;;  %v649_v12 = vsub.f32 %v645_v59, %v647_v56 }
 0x16d   :  { %v641_v13 = vsub.f32 %v637_v62, %v639_v9  ;;  %v627_v61 = vadd.f32 %v626_v3, %v1344_v36  ;;  %v715_v51 = vmin.f32 %v1350_v39, %v1393_v24  ;;  %v769_v56 = vmax.f32 %v1350_v39, %v1393_v24 }
 0x16e   :  { %v630_v46 = vsub.f32 %v628_v53, %v612_v29  ;;  %v658_v47 = vadd.f32 1e-09, %v654_v34  ;;  %v670_v50 = vpop.permute.xlu1 %669  ;;  %v609_v5 = vmax.f32 %v607_v49, 0.0  ;;  %v651_v7 = vmax.f32 %v649_v12, 0.0 }
 0x16f   :  { %v643_v20 = vmax.f32 %v641_v13, 0.0  ;;  %v681_v40 = vmin.f32 %v670_v50, %v1389_v44  ;;  %v682_v23 = vmin.f32 %v1346_v37, %v1389_v44 }
 0x170   :  { %v632_v58 = vadd.f32 1e-09, %v630_v46  ;;  %v656_v55 = vsub.f32 %v654_v34, %v630_v46  ;;  %962 = vrcp.f32 %v658_v47  ;;  %v611_v18 = vmul.f32 %v609_v5, %v577_v10 }
 0x171   :  { %v653_v36 = vmul.f32 %v651_v7, %v643_v20  ;;  %v1404_v34 = vrot.slane %v1369_v2, %v555_v43  ;;  %v761_v47 = vmax.f32 %v670_v50, %v1389_v44  ;;  %v1420_v50 = vrot.slane %v1308_v63, %v1233_v17 }
 0x172   :  { %964 = vrcp.f32 %v632_v58  ;;  %v686_v6 = vpop.permute.xlu1 %685  ;;  %v629_v48 = vsub.f32 %v627_v61, %v611_v18  ;;  %v1428_v20 = vrot.slane %v1369_v2, %v1266_v0 }
 0x173   :  { %v697_v3 = vmax.f32 %v686_v6, %v1382_v52  ;;  %v763_v25 = vmin.f32 %v686_v6, %v1382_v52  ;;  %v657_v58 = vadd.f32 1e-09, %v653_v36  ;;  %v751_v39 = vadd.f32 %v1420_v50, %v1348_v38 }
 0x174   :  { %v631_v45 = vadd.f32 1e-09, %v629_v48 }
 0x175   :  { %v699_v15 = vsub.f32 %v681_v40, %v697_v3  ;;  %v765_v59 = vsub.f32 %v761_v47, %v763_v25  ;;  %v449_v47 = vsub.f32 %v1352_v41, %v1428_v20  ;;  %v413_v41 = vsub.f32 %v1235_v19, %v1284_v4 }
 0x176   :  { %v1377_v8 = vpop.permute.xlu1 %690  ;;  %966 = vrcp.f32 %v631_v45  ;;  %v1434_v45 = vrot.slane %v1369_v2, %v1233_v17 }
 0x177   :  { %968 = vrcp.f32 %v657_v58  ;;  %v701_v9 = vmax.f32 %v699_v15, 0.0  ;;  %v767_v13 = vmax.f32 %v765_v59, 0.0 }
 0x17a   :  { %v963_v33 = vpop.eup %962 }
 0x17b   :  { %v1384_v57 = vmul.f32 %v963_v33, %v656_v55  ;;  %v1386_v14 = vpop.permute.xlu1 %708  ;;  %v1399_v53 = vpop.f32.mrb[0].mxu1 }
 0x17c   :  { %v965_v31 = vpop.eup %964  ;;  %v901_v46 = vpop.f32.mrb[1].mxu1 }
 0x17d   :  { %v1396_v42 = vmul.f32 %v965_v31, %v612_v29  ;;  %v1410_v49 = vpop.f32.mrb[2].mxu1  ;;  %v1438_v46 = vrot.slane %v1369_v2, %v1277_v60 }
 0x17e   :  { %v902_v55 = vpop.f32.mrb[3].mxu1 }
 0x17f   :  { %v664_v22 = vsub.f32 %v1396_v42, %v1384_v57  ;;  %v719_v29 = vpop.permute.xlu1 %718  ;;  %v451_v55 = vand.u32 2147483647, %v449_v47 }
 0x180   :  { %v729_v43 = vmax.f32 %v719_v29, %v1404_v34  ;;  %v771_v62 = vmin.f32 %v719_v29, %v1404_v34  ;;  %v967_v38 = vpop.eup %966 }
 0x181   :  { %v969_v29 = vpop.eup %968  ;;  %v635_v15 = vmul.f32 %v967_v38, %v611_v18  ;;  %v1458_v38 = vrot.slane %v1308_v63, %v1277_v60 }
 0x182   :  { %v731_v5 = vsub.f32 %v715_v51, %v729_v43  ;;  %v773_v6 = vsub.f32 %v769_v56, %v771_v62  ;;  %v433_v51 = vsub.f32 %v1341_v32, %v1434_v45  ;;  %v655_v43 = vsub.f32 %v653_v36, %v629_v48 }
 0x183   :  { %v1447_v56 = vrot.slane %v1369_v2, %v1311_v16  ;;  %v1454_v2 = vrot.slane %v1308_v63, %v1266_v0  ;;  %v189_v0 = vmul.f32 -0.5, %v187_v35  ;;  %v716_v63 = vmin.f32 %v1386_v14, %v1393_v24 }
 0x184   :  { %v733_v10 = vmax.f32 %v731_v5, 0.0  ;;  %v1422_v12 = vpop.permute.xlu1 %744  ;;  %v775_v61 = vmax.f32 %v773_v6, 0.0  ;;  %v661_v59 = vmul.f32 %v969_v29, %v655_v43  ;;  %v435_v5 = vand.u32 2147483647, %v433_v51 }
 0x186   :  { %v735_v7 = vmul.f32 %v733_v10, %v701_v9  ;;  %v777_v33 = vmul.f32 %v775_v61, %v767_v13  ;;  %v208_v62 = vpop.xlane.xlu0 %207  ;;  %v663_v9 = vsub.f32 %v635_v15, %v661_v59  ;;  %v453_v32 = vadd.f32 %v451_v55, %v435_v5 }
 0x187   :  { %v415_v61 = vand.u32 2147483647, %v413_v41  ;;  %v337_v15 = vsub.f32 0.0, %v1399_v53  ;;  %v730_v59 = vmax.f32 %v1363_v54, %v1404_v34  ;;  %v770_v53 = vmax.f32 %v1386_v14, %v1393_v24 }
 0x188   :  { %v753_v31 = vsub.f32 %v751_v39, %v735_v7  ;;  %v781_v3 = vadd.f32 1e-09, %v777_v33  ;;  %v772_v41 = vmin.f32 %v1363_v54, %v1404_v34 }
 0x189   :  { %v1430_v25 = vpop.permute.xlu1 %442  ;;  %v417_v29 = vadd.f32 %v415_v61, %v1279_v1  ;;  %v732_v35 = vsub.f32 %v716_v63, %v730_v59 }
 0x18a   :  { %v755_v40 = vadd.f32 1e-09, %v753_v31  ;;  %970 = vrcp.f32 %v781_v3  ;;  %v779_v36 = vsub.f32 %v777_v33, %v753_v31  ;;  %v665_v3 = vsub.f32 0.0, %v663_v9 }
 0x18b   :  { %v762_v9 = vmax.f32 %v1346_v37, %v1389_v44  ;;  %v450_v37 = vsub.f32 %v1430_v25, %v1428_v20  ;;  %v666_v20 = vsub.f32 0.0, %v664_v22 }
 0x18c   :  { %972 = vrcp.f32 %v755_v40  ;;  %v795_v31 = vmul.f32 %v1458_v38, %v665_v3 }
 0x18d   :  { %974 = vrcp.f32 %v208_v62  ;;  %v698_v62 = vmax.f32 %v1377_v8, %v1382_v52 }
 0x18e   :  { %v457_v58 = vpop.permute.xlu1 %456 }
 0x18f   :  { %v467_v17 = vsub.f32 %v457_v58, %v1438_v46  ;;  %v700_v5 = vsub.f32 %v682_v23, %v698_v62 }
 0x191   :  { %v469_v6 = vand.u32 2147483647, %v467_v17 }
 0x193   :  { %v475_v10 = vpop.permute.xlu1 %474  ;;  %v471_v39 = vadd.f32 %v469_v6, %v453_v32  ;;  %v764_v6 = vmin.f32 %v1377_v8, %v1382_v52  ;;  %v774_v32 = vsub.f32 %v770_v53, %v772_v41  ;;  %v461_v52 = vpop.permute.xlu0 %460 }
 0x194   :  { %v485_v18 = vsub.f32 %v475_v10, %v1447_v56  ;;  %v971_v48 = vpop.eup %970  ;;  %v734_v10 = vmax.f32 %v732_v35, 0.0 }
 0x195   :  { %v785_v4 = vmul.f32 %v971_v48, %v779_v36  ;;  %v766_v48 = vsub.f32 %v762_v9, %v764_v6  ;;  %v752_v36 = vadd.f32 %v1420_v50, %v1422_v12  ;;  %v468_v12 = vsub.f32 %v461_v52, %v1438_v46 }
 0x196   :  { %v973_v13 = vpop.eup %972  ;;  %v487_v16 = vand.u32 2147483647, %v485_v18  ;;  %v702_v18 = vmax.f32 %v700_v5, 0.0  ;;  %v796_v46 = vmul.f32 %v1458_v38, %v666_v20 }
 0x197   :  { %v759_v19 = vmul.f32 %v973_v13, %v735_v7  ;;  %v975_v43 = vpop.eup %974  ;;  %v776_v13 = vmax.f32 %v774_v32, 0.0  ;;  %v768_v24 = vmax.f32 %v766_v48, 0.0 }
 0x198   :  { %v489_v40 = vadd.f32 %v487_v16, %v471_v39  ;;  %v341_v1 = vmul.f32 %v975_v43, %v337_v15  ;;  %v736_v14 = vmul.f32 %v734_v10, %v702_v18  ;;  %v434_v16 = vsub.f32 %v1335_v30, %v1434_v45 }
 0x199   :  { %v787_v47 = vsub.f32 %v759_v19, %v785_v4  ;;  %v778_v39 = vmul.f32 %v776_v13, %v768_v24  ;;  %v190_v43 = vmul.f32 -0.5, %v188_v28 }
 0x19a   :  { %v495_v33 = vmul.f32 %v1454_v2, %v489_v40  ;;  %v754_v61 = vsub.f32 %v752_v36, %v736_v14  ;;  %v452_v40 = vand.u32 2147483647, %v450_v37 }
 0x19b   :  { %v789_v51 = vsub.f32 0.0, %v787_v47  ;;  %v782_v34 = vadd.f32 1e-09, %v778_v39  ;;  %v436_v47 = vand.u32 2147483647, %v434_v16 }
 0x19c   :  { %v497_v58 = vmax.f32 %v417_v29, %v495_v33  ;;  %v756_v54 = vadd.f32 1e-09, %v754_v61  ;;  %v780_v50 = vsub.f32 %v778_v39, %v754_v61  ;;  %v470_v33 = vand.u32 2147483647, %v468_v12 }
 0x19d   :  { %v797_v7 = vadd.f32 %v795_v31, %v789_v51  ;;  %v454_v51 = vadd.f32 %v452_v40, %v436_v47 }
 0x19e   :  { %v801_v17 = vadd.f32 %v497_v58, %v189_v0  ;;  %976 = vrcp.f32 %v756_v54 }
 0x19f   :  { %v799_v60 = vmax.f32 %v665_v3, %v797_v7  ;;  %978 = vrcp.f32 %v782_v34  ;;  %v472_v25 = vadd.f32 %v470_v33, %v454_v51 }
 0x1a1   :  { %v803_v55 = vadd.f32 %v801_v17, %v799_v60 }
 0x1a3   :  { %v805_v21 = vadd.f32 %v803_v55, %v341_v1 }
 0x1a5   :  { %807 = vst [vmem:[#allocation2] sm:$0xff] %v805_v21 }
 0x1a8   :  { %v977_v8 = vpop.eup %976 }
 0x1a9   :  { %v979_v44 = vpop.eup %978  ;;  %v760_v3 = vmul.f32 %v977_v8, %v736_v14 }
 0x1aa   :  { %v786_v4 = vmul.f32 %v979_v44, %v780_v50 }
 0x1ac   :  { %v788_v29 = vsub.f32 %v760_v3, %v786_v4 }
 0x1ae   :  { %v790_v30 = vsub.f32 0.0, %v788_v29 }
 0x1b0   :  { %v798_v15 = vadd.f32 %v796_v46, %v790_v30 }
 0x1b2   :  { %v800_v57 = vmax.f32 %v666_v20, %v798_v15 }
 0x1c5   :  { %v211_v19 = vpop.xlane.xlu1 %210 }
 0x1c6   :  { %980 = vrcp.f32 %v211_v19 }
 0x1c9   :  { %v479_v31 = vpop.permute.xlu1 %478 }
 0x1ca   :  { %v486_v0 = vsub.f32 %v479_v31, %v1447_v56  ;;  %v338_v56 = vsub.f32 0.0, %v1410_v49 }
 0x1cc   :  { %v488_v45 = vand.u32 2147483647, %v486_v0 }
 0x1ce   :  { %v490_v58 = vadd.f32 %v488_v45, %v472_v25 }
 0x1d0   :  { %v496_v7 = vmul.f32 %v1454_v2, %v490_v58  ;;  %v981_v60 = vpop.eup %980 }
 0x1d1   :  { %v342_v22 = vmul.f32 %v981_v60, %v338_v56 }
 0x1d2   :  { %v498_v17 = vmax.f32 %v1288_v11, %v496_v7 }
 0x1d4   :  { %v802_v42 = vadd.f32 %v498_v17, %v190_v43 }
 0x1d6   :  { %v804_v63 = vadd.f32 %v802_v42, %v800_v57 }
 0x1d8   :  { %v806_v1 = vadd.f32 %v804_v63, %v342_v22 }
 0x1da   :  { %808 = vst [vmem:[#allocation2 + $0x8] sm:$0xff] %v806_v1 }
 0x1db   :  { %993 = shalt.err (!%p990_p4)
}
 0x1dc   :  { %s994_s29 = scalar_lea.hbm %s1520_s7, 256 }
 0x1dd   :  { %p995_p5 = scmp.ne.s32.totalorder %s1520_s7, %s994_s29  ;;  %p998_p6 = scmp.lt.u32.totalorder %s994_s29, %s1520_s7 }
 0x1df   :  { %p1000_p7 = pnand %p998_p6, %p995_p5 }
 0x1e1   :  { %1003 = shalt.err (!%p1000_p7)
}
 0x1e2   :  { %s1015_s2 = smov 128   ;;  %s1016_s12 = smov 8  }
 0x1e3   :  { %820 = dma.vmem_to_hbm [thread:$0]  %s815_s25, 256, %s1520_s7, [#allocation3], %s1015_s2, %s1015_s2, %s1016_s12  }
 0x1e4   :  { %1004 = dma.done.wait [#allocation3], 256  }
 0x1e5   :  { %1005 = vsyncadd [#allocation3], 4294967040 }
 0x1e6   :  { %824 = vsyncpa [#allocation3], 1 }

</bundles_post_ra>
